<compile_context>
chip_gen: v7x
topology: tpu7x:2x2x1
jax: 0.10.0
libtpu: 0.0.40
codegen_flags: <defaults>
</compile_context>

<pallas_src>
import functools

import jax
import jax.numpy as jnp
from jax.experimental import pallas as pl
from jax.experimental.pallas import tpu as pltpu

LOG_STD_MAX = 2.0
LOG_STD_MIN = -20.0


def _round_up(v, m):
    return (v + m - 1) // m * m


def sac_actor_kernel(x_ref, w1_ref, b1_ref, w2_ref, b2_ref, wh_ref, bh_ref, out_ref):
    """One batch tile: latent MLP + fused (mean||logstd) head + clamp/exp."""
    mm_dtype = w1_ref.dtype

    # latent MLP: obs -> 256 -> 256, ReLU (bias add / ReLU kept in f32)
    h = jnp.dot(x_ref[...], w1_ref[...], preferred_element_type=jnp.float32)
    h = jnp.maximum(h + b1_ref[...], 0.0)
    h = jnp.dot(h.astype(mm_dtype), w2_ref[...], preferred_element_type=jnp.float32)
    h = jnp.maximum(h + b2_ref[...], 0.0)

    # fused heads: columns [0:half) = mean, [half:2*half) = logstd (zero padded)
    heads = jnp.dot(h.astype(mm_dtype), wh_ref[...], preferred_element_type=jnp.float32)
    heads = heads + bh_ref[...]

    half = heads.shape[-1] // 2          # 128-aligned split -> static lane-dense slices
    out_ref[:, :half] = heads[:, :half].astype(out_ref.dtype)                 # mean
    logstd = jnp.clip(heads[:, half:], LOG_STD_MIN, LOG_STD_MAX)
    out_ref[:, half:] = jnp.exp(logstd).astype(out_ref.dtype)                 # std (EUP)


@functools.partial(jax.jit, static_argnames=("tile_b", "matmul_dtype"))
def sac_actor_forward(x, params, *, tile_b=None, matmul_dtype=jnp.float32):
    """Returns (mean, std) of the SAC policy Normal distribution."""
    w1, b1, w2, b2, wm, bm, ws, bs = params
    B, obs_dim = x.shape
    hidden = w1.shape[1]
    ncat = wm.shape[1]

    # --- wrapper-side layout plumbing (all static-shape, cheap) ----------------
    k_pad = _round_up(obs_dim, 128)                 # contraction dim -> full lanes
    half = _round_up(ncat, 128)                     # lane-dense head width per output

    w1p = jnp.zeros((k_pad, hidden), jnp.float32).at[:obs_dim, :].set(w1)
    wh = (jnp.zeros((hidden, 2 * half), jnp.float32)
          .at[:, :ncat].set(wm)
          .at[:, half:half + ncat].set(ws))
    bh = (jnp.zeros((1, 2 * half), jnp.float32)
          .at[:, :ncat].set(bm)
          .at[:, half:half + ncat].set(bs))

    # batch tile: MXU-sized rows, padded batch so every tile is full
    if tile_b is None:
        tile_b = min(_round_up(B, 8), 256)
    b_pad = _round_up(B, tile_b)
    xp = jnp.zeros((b_pad, k_pad), jnp.float32).at[:B, :obs_dim].set(x)

    # optional bf16 MXU inputs (f32 accumulation stays in the kernel)
    xp = xp.astype(matmul_dtype)
    w1p = w1p.astype(matmul_dtype)
    w2c = w2.astype(matmul_dtype)
    whc = wh.astype(matmul_dtype)

    grid = (b_pad // tile_b,)
    full = lambda a: pl.BlockSpec(a.shape, lambda i: (0,) * a.ndim)

    out = pl.pallas_call(
        sac_actor_kernel,
        out_shape=jax.ShapeDtypeStruct((b_pad, 2 * half), jnp.float32),
        grid_spec=pltpu.PrefetchScalarGridSpec(
            num_scalar_prefetch=0,
            grid=grid,
            in_specs=[
                pl.BlockSpec((tile_b, k_pad), lambda i: (i, 0)),   # x tile
                full(w1p), full(b1),
                full(w2c), full(b2),
                full(whc), full(bh),
            ],
            out_specs=pl.BlockSpec((tile_b, 2 * half), lambda i: (i, 0)),
        ),
        compiler_params=pltpu.CompilerParams(
            dimension_semantics=("parallel",)),
    )(xp, w1p, b1, w2c, b2, whc, bh)

    mean = out[:B, :ncat]
    std = out[:B, half:half + ncat]
    return mean, std


def make_params(key, obs_dim, hidden, ncat):
    """Deterministic synthetic parameters (weights_init gains: mean=0.01, logstd=1)."""
    k1, k2, k3, k4 = jax.random.split(key, 4)

    def lin(k, fan_in, fan_out, gain):
        w = gain * jax.random.normal(k, (fan_in, fan_out), jnp.float32) / jnp.sqrt(fan_in)
        b = jnp.zeros((1, fan_out), jnp.float32)
        return w, b

    w1, b1 = lin(k1, obs_dim, hidden, 1.0)      # latent layer 1
    w2, b2 = lin(k2, hidden, hidden, 1.0)       # latent layer 2
    wm, bm = lin(k3, hidden, ncat, 0.01)        # mean head   (gain=0.01)
    ws, bs = lin(k4, hidden, ncat, 1.0)         # logstd head (gain=1)
    return (w1, b1, w2, b2, wm, bm, ws, bs)


def reference_forward(x, params):
    w1, b1, w2, b2, wm, bm, ws, bs = params
    h = jnp.maximum(x @ w1 + b1, 0.0)
    h = jnp.maximum(h @ w2 + b2, 0.0)
    mean = h @ wm + bm
    logstd = jnp.clip(h @ ws + bs, LOG_STD_MIN, LOG_STD_MAX)
    return mean, jnp.exp(logstd)


# TODO(synk): Normal(mean, std) construction, rsample / log_prob and the tanh-squash
# in .step() are distribution-object / host-side logic, not part of this kernel.

if __name__ == "__main__":
    B, OBS, HIDDEN, NCAT = 16, 8, 256, 4   # indim=256; ncat = action dim

    key = jax.random.PRNGKey(0)
    kx, kp = jax.random.split(key)
    x = jax.random.normal(kx, (B, OBS), jnp.float32)
    params = make_params(kp, OBS, HIDDEN, NCAT)

    mean_ref, std_ref = reference_forward(x, params)

    # f32 MXU path: matches the f32 reference tightly
    mean, std = sac_actor_forward(x, params)
    jax.block_until_ready((mean, std))
    assert mean.shape == (B, NCAT) and std.shape == (B, NCAT)
    assert jnp.allclose(mean, mean_ref, atol=1e-5, rtol=1e-5)
    assert jnp.allclose(std, std_ref, atol=1e-5, rtol=1e-5)
    assert bool(jnp.all(std > 0))

    # bf16 MXU-input path (f32 accumulation): looser tolerance
    mean_bf, std_bf = sac_actor_forward(x, params, matmul_dtype=jnp.bfloat16)
    jax.block_until_ready((mean_bf, std_bf))
    assert mean_bf.shape == (B, NCAT) and std_bf.shape == (B, NCAT)
    assert jnp.allclose(mean_bf, mean_ref, atol=1e-1, rtol=1e-1)
    assert jnp.allclose(std_bf, std_ref, atol=1e-1, rtol=1e-1)
    assert bool(jnp.all(std_bf > 0))

    print("KERNEL_OK")
</pallas_src>

<mosaic_0001>
module attributes {stable_mosaic.version = 11 : i64} {
  func.func @sac_actor_kernel(%arg0: i32, %arg1: memref<16x128xf32, #tpu.memory_space<vmem>>, %arg2: memref<128x256xf32, #tpu.memory_space<vmem>>, %arg3: memref<1x256xf32, #tpu.memory_space<vmem>>, %arg4: memref<256x256xf32, #tpu.memory_space<vmem>>, %arg5: memref<1x256xf32, #tpu.memory_space<vmem>>, %arg6: memref<256x256xf32, #tpu.memory_space<vmem>>, %arg7: memref<1x256xf32, #tpu.memory_space<vmem>>, %arg8: memref<16x256xf32, #tpu.memory_space<vmem>>) attributes {dimension_semantics = [#tpu.dimension_semantics<parallel>], iteration_bounds = array<i64: 1>, scalar_prefetch = 0 : i64, scratch_operands = 0 : i64, tpu.core_type = #tpu.core_type<tc>, window_params = [{transform_indices = @transform_0, window_bounds = array<i64: 16, 128>}, {pipeline_mode = #tpu.pipeline_mode<synchronous>, transform_indices = @transform_1, window_bounds = array<i64: 128, 256>}, {pipeline_mode = #tpu.pipeline_mode<synchronous>, transform_indices = @transform_2, window_bounds = array<i64: 1, 256>}, {pipeline_mode = #tpu.pipeline_mode<synchronous>, transform_indices = @transform_3, window_bounds = array<i64: 256, 256>}, {pipeline_mode = #tpu.pipeline_mode<synchronous>, transform_indices = @transform_4, window_bounds = array<i64: 1, 256>}, {pipeline_mode = #tpu.pipeline_mode<synchronous>, transform_indices = @transform_5, window_bounds = array<i64: 256, 256>}, {pipeline_mode = #tpu.pipeline_mode<synchronous>, transform_indices = @transform_6, window_bounds = array<i64: 1, 256>}, {transform_indices = @transform_7, window_bounds = array<i64: 16, 256>}]} {
    %c0 = arith.constant 0 : index
    %c0_0 = arith.constant 0 : index
    %0 = vector.load %arg1[%c0, %c0_0] : memref<16x128xf32, #tpu.memory_space<vmem>>, vector<16x128xf32>
    %c0_1 = arith.constant 0 : index
    %c0_2 = arith.constant 0 : index
    %1 = vector.load %arg2[%c0_1, %c0_2] : memref<128x256xf32, #tpu.memory_space<vmem>>, vector<128x256xf32>
    %cst = arith.constant dense<0.000000e+00> : vector<16x256xf32>
    %2 = tpu.matmul %0, %1, %cst {dimension_numbers = #tpu.dot_dimension_numbers<[1], [0], [0], [1], [0, 0, 1, 1], [], []>} : vector<16x128xf32>, vector<128x256xf32>, vector<16x256xf32> -> vector<16x256xf32>
    %c0_3 = arith.constant 0 : index
    %c0_4 = arith.constant 0 : index
    %3 = vector.load %arg3[%c0_3, %c0_4] : memref<1x256xf32, #tpu.memory_space<vmem>>, vector<1x256xf32>
    %4 = vector.broadcast %3 : vector<1x256xf32> to vector<16x256xf32>
    %5 = arith.addf %2, %4 : vector<16x256xf32>
    %cst_5 = arith.constant 0.000000e+00 : f32
    %6 = vector.broadcast %cst_5 : f32 to vector<16x256xf32>
    %7 = arith.maximumf %5, %6 : vector<16x256xf32>
    %c0_6 = arith.constant 0 : index
    %c0_7 = arith.constant 0 : index
    %8 = vector.load %arg4[%c0_6, %c0_7] : memref<256x256xf32, #tpu.memory_space<vmem>>, vector<256x256xf32>
    %cst_8 = arith.constant dense<0.000000e+00> : vector<16x256xf32>
    %9 = tpu.matmul %7, %8, %cst_8 {dimension_numbers = #tpu.dot_dimension_numbers<[1], [0], [0], [1], [0, 0, 1, 1], [], []>} : vector<16x256xf32>, vector<256x256xf32>, vector<16x256xf32> -> vector<16x256xf32>
    %c0_9 = arith.constant 0 : index
    %c0_10 = arith.constant 0 : index
    %10 = vector.load %arg5[%c0_9, %c0_10] : memref<1x256xf32, #tpu.memory_space<vmem>>, vector<1x256xf32>
    %11 = vector.broadcast %10 : vector<1x256xf32> to vector<16x256xf32>
    %12 = arith.addf %9, %11 : vector<16x256xf32>
    %cst_11 = arith.constant 0.000000e+00 : f32
    %13 = vector.broadcast %cst_11 : f32 to vector<16x256xf32>
    %14 = arith.maximumf %12, %13 : vector<16x256xf32>
    %c0_12 = arith.constant 0 : index
    %c0_13 = arith.constant 0 : index
    %15 = vector.load %arg6[%c0_12, %c0_13] : memref<256x256xf32, #tpu.memory_space<vmem>>, vector<256x256xf32>
    %cst_14 = arith.constant dense<0.000000e+00> : vector<16x256xf32>
    %16 = tpu.matmul %14, %15, %cst_14 {dimension_numbers = #tpu.dot_dimension_numbers<[1], [0], [0], [1], [0, 0, 1, 1], [], []>} : vector<16x256xf32>, vector<256x256xf32>, vector<16x256xf32> -> vector<16x256xf32>
    %c0_15 = arith.constant 0 : index
    %c0_16 = arith.constant 0 : index
    %17 = vector.load %arg7[%c0_15, %c0_16] : memref<1x256xf32, #tpu.memory_space<vmem>>, vector<1x256xf32>
    %18 = vector.broadcast %17 : vector<1x256xf32> to vector<16x256xf32>
    %19 = arith.addf %16, %18 : vector<16x256xf32>
    %20 = vector.extract_strided_slice %19 {offsets = [0, 0], sizes = [16, 128], strides = [1, 1]} : vector<16x256xf32> to vector<16x128xf32>
    %c0_17 = arith.constant 0 : index
    %c0_18 = arith.constant 0 : index
    %21 = vector.load %arg8[%c0_17, %c0_18] : memref<16x256xf32, #tpu.memory_space<vmem>>, vector<16x128xf32>
    tpu.vector_store %arg8[%c0_17, %c0_18], %20 {strides = array<i32>} : memref<16x256xf32, #tpu.memory_space<vmem>>, vector<16x128xf32>,
    %22 = vector.extract_strided_slice %19 {offsets = [0, 128], sizes = [16, 128], strides = [1, 1]} : vector<16x256xf32> to vector<16x128xf32>
    %cst_19 = arith.constant -2.000000e+01 : f32
    %cst_20 = arith.constant 2.000000e+00 : f32
    %23 = vector.broadcast %cst_19 : f32 to vector<16x128xf32>
    %24 = arith.maximumf %23, %22 : vector<16x128xf32>
    %25 = vector.broadcast %cst_20 : f32 to vector<16x128xf32>
    %26 = arith.minimumf %25, %24 : vector<16x128xf32>
    %27 = math.exp %26 : vector<16x128xf32>
    %c0_21 = arith.constant 0 : index
    %c128 = arith.constant 128 : index
    %28 = vector.load %arg8[%c0_21, %c128] : memref<16x256xf32, #tpu.memory_space<vmem>>, vector<16x128xf32>
    tpu.vector_store %arg8[%c0_21, %c128], %27 {strides = array<i32>} : memref<16x256xf32, #tpu.memory_space<vmem>>, vector<16x128xf32>,
    return
  }
  func.func @transform_0(%arg0: i32) -> (i32, i32) {
    %c0_i32 = arith.constant 0 : i32
    %c0_i32_0 = arith.constant 0 : i32
    return %arg0, %c0_i32 : i32, i32
  }
  func.func @transform_1(%arg0: i32) -> (i32, i32) {
    %c0_i32 = arith.constant 0 : i32
    %c0_i32_0 = arith.constant 0 : i32
    %c0_i32_1 = arith.constant 0 : i32
    return %c0_i32, %c0_i32_0 : i32, i32
  }
  func.func @transform_2(%arg0: i32) -> (i32, i32) {
    %c0_i32 = arith.constant 0 : i32
    %c0_i32_0 = arith.constant 0 : i32
    %c0_i32_1 = arith.constant 0 : i32
    return %c0_i32, %c0_i32_0 : i32, i32
  }
  func.func @transform_3(%arg0: i32) -> (i32, i32) {
    %c0_i32 = arith.constant 0 : i32
    %c0_i32_0 = arith.constant 0 : i32
    %c0_i32_1 = arith.constant 0 : i32
    return %c0_i32, %c0_i32_0 : i32, i32
  }
  func.func @transform_4(%arg0: i32) -> (i32, i32) {
    %c0_i32 = arith.constant 0 : i32
    %c0_i32_0 = arith.constant 0 : i32
    %c0_i32_1 = arith.constant 0 : i32
    return %c0_i32, %c0_i32_0 : i32, i32
  }
  func.func @transform_5(%arg0: i32) -> (i32, i32) {
    %c0_i32 = arith.constant 0 : i32
    %c0_i32_0 = arith.constant 0 : i32
    %c0_i32_1 = arith.constant 0 : i32
    return %c0_i32, %c0_i32_0 : i32, i32
  }
  func.func @transform_6(%arg0: i32) -> (i32, i32) {
    %c0_i32 = arith.constant 0 : i32
    %c0_i32_0 = arith.constant 0 : i32
    %c0_i32_1 = arith.constant 0 : i32
    return %c0_i32, %c0_i32_0 : i32, i32
  }
  func.func @transform_7(%arg0: i32) -> (i32, i32) {
    %c0_i32 = arith.constant 0 : i32
    %c0_i32_0 = arith.constant 0 : i32
    return %arg0, %c0_i32 : i32, i32
  }
}

</mosaic_0001>

<bundles_post_ra>
// kernel: sac_actor_forward.1
= control target key start
LH: loop header
LB: loop body
LE: loop exit
PB: predicated region body
PF: predicated region fallthrough
CT: control target
= control target key end

     0   :  { %v644_v3 = vmov 0.0   ;;  %s1194_s1 = inlined_call_operand.vmem [shape: f32[128,256], index: 1, kind: input, shape index: {}]   ;;  %s1195_s3 = inlined_call_operand.vmem [shape: f32[256,256], index: 3, kind: input, shape index: {}]   ;;  %s1196_s0 = inlined_call_operand.vmem [shape: f32[16,128], index: 0, kind: input, shape index: {}]   ;;  %s1197_s5 = inlined_call_operand.vmem [shape: f32[256,256], index: 5, kind: input, shape index: {}]   ;;  %s1198_s2 = inlined_call_operand.vmem [shape: f32[1,256], index: 2, kind: input, shape index: {}]   ;;  %s1199_s4 = inlined_call_operand.vmem [shape: f32[1,256], index: 4, kind: input, shape index: {}]   ;;  %s1200_s6 = inlined_call_operand.vmem [shape: f32[1,256], index: 6, kind: input, shape index: {}]   ;;  %s1201_s7 = inlined_call_operand.vmem [shape: f32[16,256], index: 7, kind: output, shape index: {}]  }
   0x1   :  { %v29_v0 = vld [vmem:[%s1194_s1 + $0x8] sm:$0xff]  ;;  %v31_v1 = vld [vmem:[%s1194_s1 + $0x18] sm:$0xff]  ;;  %v28_v2 = vld [vmem:[%s1194_s1] sm:$0xff]  ;;  %136 = vmatprep.mubr.f32.mxu0 %v644_v3 }
   0x2   :  { %v479_v4 = vpack.c.bf16 %v31_v1, %v29_v0  ;;  %v30_v5 = vld [vmem:[%s1194_s1 + $0x10] sm:$0xff]  ;;  %v33_v6 = vld [vmem:[%s1194_s1 + $0x28] sm:$0xff]  ;;  %v35_v7 = vld [vmem:[%s1194_s1 + $0x38] sm:$0xff] }
   0x3   :  { %v481_v8 = vpack.c.bf16 %v30_v5, %v28_v2  ;;  %v483_v9 = vpack.c.bf16 %v35_v7, %v33_v6  ;;  %v32_v10 = vld [vmem:[%s1194_s1 + $0x20] sm:$0xff]  ;;  %v34_v11 = vld [vmem:[%s1194_s1 + $0x30] sm:$0xff]  ;;  %v37_v12 = vld [vmem:[%s1194_s1 + $0x48] sm:$0xff] }
   0x4   :  { %480 = vmatprep.subr.bf16.mxu0 %v479_v4  ;;  %v39_v13 = vld [vmem:[%s1194_s1 + $0x58] sm:$0xff]  ;;  %v485_v14 = vpack.c.bf16 %v34_v11, %v32_v10  ;;  %v36_v16 = vld [vmem:[%s1194_s1 + $0x40] sm:$0xff]  ;;  %v38_v17 = vld [vmem:[%s1194_s1 + $0x50] sm:$0xff] }
   0x5   :  { %482 = vmatpush1.bf16.msra.mxu0 %v481_v8  ;;  %v487_v15 = vpack.c.bf16 %v39_v13, %v37_v12  ;;  %v41_v18 = vld [vmem:[%s1194_s1 + $0x68] sm:$0xff]  ;;  %v43_v19 = vld [vmem:[%s1194_s1 + $0x78] sm:$0xff]  ;;  %v489_v20 = vpack.c.bf16 %v38_v17, %v36_v16  ;;  %v40_v22 = vld [vmem:[%s1194_s1 + $0x60] sm:$0xff] }
   0x6   :  { %484 = vmatprep.subr.bf16.mxu0 %v483_v9  ;;  %v491_v21 = vpack.c.bf16 %v43_v19, %v41_v18  ;;  %v42_v23 = vld [vmem:[%s1194_s1 + $0x70] sm:$0xff]  ;;  %v45_v24 = vld [vmem:[%s1194_s1 + $0x88] sm:$0xff]  ;;  %v47_v25 = vld [vmem:[%s1194_s1 + $0x98] sm:$0xff] }
   0x7   :  { %v44_v26 = vld [vmem:[%s1194_s1 + $0x80] sm:$0xff]  ;;  %v46_v27 = vld [vmem:[%s1194_s1 + $0x90] sm:$0xff]  ;;  %v154_v28 = vld [vmem:[%s1195_s3 + $0x8] sm:$0xff]  ;;  %v493_v30 = vpack.c.bf16 %v42_v23, %v40_v22  ;;  %v495_v36 = vpack.c.bf16 %v47_v25, %v45_v24 }
   0x8   :  { %v156_v29 = vld [vmem:[%s1195_s3 + $0x18] sm:$0xff]  ;;  %v49_v31 = vld [vmem:[%s1194_s1 + $0xa8] sm:$0xff]  ;;  %v153_v33 = vld [vmem:[%s1195_s3] sm:$0xff]  ;;  %v497_v46 = vpack.c.bf16 %v46_v27, %v44_v26 }
   0x9   :  { %486 = vmatpush1.bf16.msra.mxu0 %v485_v14  ;;  %v511_v32 = vpack.c.bf16 %v156_v29, %v154_v28  ;;  %v155_v34 = vld [vmem:[%s1195_s3 + $0x10] sm:$0xff]  ;;  %v158_v35 = vld [vmem:[%s1195_s3 + $0x28] sm:$0xff]  ;;  %v160_v38 = vld [vmem:[%s1195_s3 + $0x38] sm:$0xff] }
   0xa   :  { %488 = vmatprep.subr.bf16.mxu0 %v487_v15  ;;  %v513_v37 = vpack.c.bf16 %v155_v34, %v153_v33  ;;  %v157_v39 = vld [vmem:[%s1195_s3 + $0x20] sm:$0xff]  ;;  %v159_v40 = vld [vmem:[%s1195_s3 + $0x30] sm:$0xff]  ;;  %v51_v41 = vld [vmem:[%s1194_s1 + $0xb8] sm:$0xff]  ;;  %v515_v42 = vpack.c.bf16 %v160_v38, %v158_v35 }
   0xb   :  { %512 = vmatprep.subr.bf16.mxu1 %v511_v32  ;;  %v162_v43 = vld [vmem:[%s1195_s3 + $0x48] sm:$0xff]  ;;  %v164_v44 = vld [vmem:[%s1195_s3 + $0x58] sm:$0xff]  ;;  %v517_v45 = vpack.c.bf16 %v159_v40, %v157_v39  ;;  %v48_v47 = vld [vmem:[%s1194_s1 + $0xa0] sm:$0xff]  ;;  %v499_v51 = vpack.c.bf16 %v51_v41, %v49_v31 }
   0xc   :  { %514 = vmatpush1.bf16.msra.mxu1 %v513_v37  ;;  %v519_v48 = vpack.c.bf16 %v164_v44, %v162_v43  ;;  %v161_v49 = vld [vmem:[%s1195_s3 + $0x40] sm:$0xff]  ;;  %v163_v50 = vld [vmem:[%s1195_s3 + $0x50] sm:$0xff]  ;;  %v166_v53 = vld [vmem:[%s1195_s3 + $0x68] sm:$0xff] }
   0xd   :  { %490 = vmatpush1.bf16.msra.mxu0 %v489_v20  ;;  %516 = vmatprep.subr.bf16.mxu1 %v515_v42  ;;  %v50_v52 = vld [vmem:[%s1194_s1 + $0xb0] sm:$0xff]  ;;  %v168_v54 = vld [vmem:[%s1195_s3 + $0x78] sm:$0xff]  ;;  %v53_v55 = vld [vmem:[%s1194_s1 + $0xc8] sm:$0xff]  ;;  %v521_v57 = vpack.c.bf16 %v163_v50, %v161_v49 }
   0xe   :  { %492 = vmatprep.subr.bf16.mxu0 %v491_v21  ;;  %v55_v56 = vld [vmem:[%s1194_s1 + $0xd8] sm:$0xff]  ;;  %v501_v58 = vpack.c.bf16 %v50_v52, %v48_v47  ;;  %v52_v59 = vld [vmem:[%s1194_s1 + $0xc0] sm:$0xff]  ;;  %v523_v60 = vpack.c.bf16 %v168_v54, %v166_v53  ;;  %v167_v62 = vld [vmem:[%s1195_s3 + $0x70] sm:$0xff] }
   0xf   :  { %v165_v61 = vld [vmem:[%s1195_s3 + $0x60] sm:$0xff]  ;;  %v503_v63 = vpack.c.bf16 %v55_v56, %v53_v55  ;;  %v54_v0 = vld [vmem:[%s1194_s1 + $0xd0] sm:$0xff]  ;;  %v170_v1 = vld [vmem:[%s1195_s3 + $0x88] sm:$0xff] }
  0x10   :  { %518 = vmatpush1.bf16.msra.mxu1 %v517_v45  ;;  %v172_v2 = vld [vmem:[%s1195_s3 + $0x98] sm:$0xff]  ;;  %v57_v4 = vld [vmem:[%s1194_s1 + $0xe8] sm:$0xff]  ;;  %v525_v6 = vpack.c.bf16 %v167_v62, %v165_v61  ;;  %v505_v7 = vpack.c.bf16 %v54_v0, %v52_v59  ;;  %v56_v8 = vld [vmem:[%s1194_s1 + $0xe0] sm:$0xff] }
  0x11   :  { %494 = vmatpush1.bf16.msra.mxu0 %v493_v30  ;;  %520 = vmatprep.subr.bf16.mxu1 %v519_v48  ;;  %v59_v5 = vld [vmem:[%s1194_s1 + $0xf8] sm:$0xff]  ;;  %v527_v9 = vpack.c.bf16 %v172_v2, %v170_v1  ;;  %v169_v10 = vld [vmem:[%s1195_s3 + $0x80] sm:$0xff]  ;;  %v171_v11 = vld [vmem:[%s1195_s3 + $0x90] sm:$0xff] }
  0x12   :  { %496 = vmatprep.subr.bf16.mxu0 %v495_v36  ;;  %v507_v12 = vpack.c.bf16 %v59_v5, %v57_v4  ;;  %v58_v13 = vld [vmem:[%s1194_s1 + $0xf0] sm:$0xff]  ;;  %v174_v14 = vld [vmem:[%s1195_s3 + $0xa8] sm:$0xff]  ;;  %v176_v15 = vld [vmem:[%s1195_s3 + $0xb8] sm:$0xff]  ;;  %v529_v16 = vpack.c.bf16 %v171_v11, %v169_v10 }
  0x13   :  { %v509_v17 = vpack.c.bf16 %v58_v13, %v56_v8  ;;  %v531_v18 = vpack.c.bf16 %v176_v15, %v174_v14  ;;  %v173_v19 = vld [vmem:[%s1195_s3 + $0xa0] sm:$0xff]  ;;  %v175_v20 = vld [vmem:[%s1195_s3 + $0xb0] sm:$0xff]  ;;  %v178_v21 = vld [vmem:[%s1195_s3 + $0xc8] sm:$0xff] }
  0x14   :  { %522 = vmatpush1.bf16.msra.mxu1 %v521_v57  ;;  %v180_v22 = vld [vmem:[%s1195_s3 + $0xd8] sm:$0xff]  ;;  %v533_v23 = vpack.c.bf16 %v175_v20, %v173_v19  ;;  %v26_v24 = vld [vmem:[%s1196_s0] sm:$0xff]  ;;  %v179_v27 = vld [vmem:[%s1195_s3 + $0xd0] sm:$0xff] }
  0x15   :  { %498 = vmatpush1.bf16.msra.mxu0 %v497_v46  ;;  %524 = vmatprep.subr.bf16.mxu1 %v523_v60  ;;  %v535_v25 = vpack.c.bf16 %v180_v22, %v178_v21  ;;  %v177_v26 = vld [vmem:[%s1195_s3 + $0xc0] sm:$0xff]  ;;  %v182_v28 = vld [vmem:[%s1195_s3 + $0xe8] sm:$0xff]  ;;  %v184_v29 = vld [vmem:[%s1195_s3 + $0xf8] sm:$0xff] }
  0x16   :  { %500 = vmatprep.subr.bf16.mxu0 %v499_v51  ;;  %v537_v30 = vpack.c.bf16 %v179_v27, %v177_v26  ;;  %v27_v31 = vld [vmem:[%s1196_s0 + $0x8] sm:$0xff]  ;;  %v539_v32 = vpack.c.bf16 %v184_v29, %v182_v28  ;;  %v181_v33 = vld [vmem:[%s1195_s3 + $0xe0] sm:$0xff]  ;;  %v183_v34 = vld [vmem:[%s1195_s3 + $0xf0] sm:$0xff] }
  0x17   :  { %v186_v35 = vld [vmem:[%s1195_s3 + $0x108] sm:$0xff]  ;;  %v541_v36 = vpack.c.bf16 %v183_v34, %v181_v33  ;;  %v185_v38 = vld [vmem:[%s1195_s3 + $0x100] sm:$0xff]  ;;  %v187_v39 = vld [vmem:[%s1195_s3 + $0x110] sm:$0xff] }
  0x18   :  { %526 = vmatpush1.bf16.msra.mxu1 %v525_v6  ;;  %v190_v40 = vld [vmem:[%s1195_s3 + $0x128] sm:$0xff]  ;;  %v192_v41 = vld [vmem:[%s1195_s3 + $0x138] sm:$0xff]  ;;  %v545_v42 = vpack.c.bf16 %v187_v39, %v185_v38  ;;  %v189_v44 = vld [vmem:[%s1195_s3 + $0x120] sm:$0xff] }
  0x19   :  { %502 = vmatpush1.bf16.msra.mxu0 %v501_v58  ;;  %528 = vmatprep.subr.bf16.mxu1 %v527_v9  ;;  %v547_v43 = vpack.c.bf16 %v192_v41, %v190_v40  ;;  %v191_v45 = vld [vmem:[%s1195_s3 + $0x130] sm:$0xff]  ;;  %v194_v46 = vld [vmem:[%s1195_s3 + $0x148] sm:$0xff]  ;;  %v196_v47 = vld [vmem:[%s1195_s3 + $0x158] sm:$0xff] }
  0x1a   :  { %504 = vmatprep.subr.bf16.mxu0 %v503_v63  ;;  %v549_v48 = vpack.c.bf16 %v191_v45, %v189_v44  ;;  %v551_v49 = vpack.c.bf16 %v196_v47, %v194_v46  ;;  %v193_v50 = vld [vmem:[%s1195_s3 + $0x140] sm:$0xff]  ;;  %v195_v51 = vld [vmem:[%s1195_s3 + $0x150] sm:$0xff]  ;;  %v198_v52 = vld [vmem:[%s1195_s3 + $0x168] sm:$0xff] }
  0x1b   :  { %v200_v53 = vld [vmem:[%s1195_s3 + $0x178] sm:$0xff]  ;;  %v553_v54 = vpack.c.bf16 %v195_v51, %v193_v50  ;;  %v197_v56 = vld [vmem:[%s1195_s3 + $0x160] sm:$0xff]  ;;  %v199_v57 = vld [vmem:[%s1195_s3 + $0x170] sm:$0xff] }
  0x1c   :  { %530 = vmatpush1.bf16.msra.mxu1 %v529_v16  ;;  %v555_v55 = vpack.c.bf16 %v200_v53, %v198_v52  ;;  %v202_v58 = vld [vmem:[%s1195_s3 + $0x188] sm:$0xff]  ;;  %v204_v59 = vld [vmem:[%s1195_s3 + $0x198] sm:$0xff]  ;;  %v557_v60 = vpack.c.bf16 %v199_v57, %v197_v56  ;;  %v201_v62 = vld [vmem:[%s1195_s3 + $0x180] sm:$0xff] }
  0x1d   :  { %506 = vmatpush1.bf16.msra.mxu0 %v505_v7  ;;  %532 = vmatprep.subr.bf16.mxu1 %v531_v18  ;;  %v559_v61 = vpack.c.bf16 %v204_v59, %v202_v58  ;;  %v203_v63 = vld [vmem:[%s1195_s3 + $0x190] sm:$0xff]  ;;  %v206_v0 = vld [vmem:[%s1195_s3 + $0x1a8] sm:$0xff]  ;;  %v208_v1 = vld [vmem:[%s1195_s3 + $0x1b8] sm:$0xff] }
  0x1e   :  { %508 = vmatprep.subr.bf16.mxu0 %v507_v12  ;;  %v561_v2 = vpack.c.bf16 %v203_v63, %v201_v62  ;;  %v563_v4 = vpack.c.bf16 %v208_v1, %v206_v0  ;;  %v205_v5 = vld [vmem:[%s1195_s3 + $0x1a0] sm:$0xff]  ;;  %v207_v6 = vld [vmem:[%s1195_s3 + $0x1b0] sm:$0xff]  ;;  %v210_v7 = vld [vmem:[%s1195_s3 + $0x1c8] sm:$0xff] }
  0x1f   :  { %v212_v8 = vld [vmem:[%s1195_s3 + $0x1d8] sm:$0xff]  ;;  %v565_v9 = vpack.c.bf16 %v207_v6, %v205_v5  ;;  %v209_v11 = vld [vmem:[%s1195_s3 + $0x1c0] sm:$0xff]  ;;  %v211_v12 = vld [vmem:[%s1195_s3 + $0x1d0] sm:$0xff] }
  0x20   :  { %534 = vmatpush1.bf16.msra.mxu1 %v533_v23  ;;  %v567_v10 = vpack.c.bf16 %v212_v8, %v210_v7  ;;  %v569_v13 = vpack.c.bf16 %v211_v12, %v209_v11  ;;  %v214_v14 = vld [vmem:[%s1195_s3 + $0x1e8] sm:$0xff]  ;;  %v216_v15 = vld [vmem:[%s1195_s3 + $0x1f8] sm:$0xff]  ;;  %v215_v18 = vld [vmem:[%s1195_s3 + $0x1f0] sm:$0xff] }
  0x21   :  { %510 = vmatpush1.bf16.msra.mxu0 %v509_v17  ;;  %536 = vmatprep.subr.bf16.mxu1 %v535_v25  ;;  %v571_v16 = vpack.c.bf16 %v216_v15, %v214_v14  ;;  %v213_v17 = vld [vmem:[%s1195_s3 + $0x1e0] sm:$0xff]  ;;  %v311_v20 = vld [vmem:[%s1197_s5 + $0x8] sm:$0xff]  ;;  %v313_v21 = vld [vmem:[%s1197_s5 + $0x18] sm:$0xff] }
  0x22   :  { %v573_v19 = vpack.c.bf16 %v215_v18, %v213_v17  ;;  %v310_v22 = vld [vmem:[%s1197_s5] sm:$0xff]  ;;  %v575_v23 = vpack.c.bf16 %v313_v21, %v311_v20  ;;  %v315_v25 = vld [vmem:[%s1197_s5 + $0x28] sm:$0xff]  ;;  %v317_v26 = vld [vmem:[%s1197_s5 + $0x38] sm:$0xff] }
  0x23   :  { %v579_v28 = vpack.c.bf16 %v317_v26, %v315_v25  ;;  %v314_v29 = vld [vmem:[%s1197_s5 + $0x20] sm:$0xff]  ;;  %v324_v41 = vld [vmem:[%s1197_s5 + $0x70] sm:$0xff]  ;;  %v351_v15 = vld [vmem:[%s1197_s5 + $0x148] sm:$0xff] }
  0x24   :  { %137 = vmatmul.mubr.f32.vlgmr.msra.gmra.mrb[0].mxu0 %v26_v24  ;;  %538 = vmatpush1.bf16.msra.mxu1 %v537_v30  ;;  %v312_v24 = vld [vmem:[%s1197_s5 + $0x10] sm:$0xff]  ;;  %v322_v40 = vld [vmem:[%s1197_s5 + $0x60] sm:$0xff]  ;;  %v355_v21 = vld [vmem:[%s1197_s5 + $0x168] sm:$0xff] }
  0x25   :  { %142 = vmatprep.mubr.f32.mxu0 %v644_v3  ;;  %v188_v3 = vld [vmem:[%s1195_s3 + $0x118] sm:$0xff]  ;;  %540 = vmatprep.subr.bf16.mxu1 %v539_v32  ;;  %v577_v27 = vpack.c.bf16 %v312_v24, %v310_v22  ;;  %v316_v30 = vld [vmem:[%s1197_s5 + $0x30] sm:$0xff]  ;;  %v589_v44 = vpack.c.bf16 %v324_v41, %v322_v40  ;;  %v326_v46 = vld [vmem:[%s1197_s5 + $0x80] sm:$0xff] }
  0x26   :  { %v543_v37 = vpack.c.bf16 %v188_v3, %v186_v35  ;;  %576 = vmatprep.subr.bf16.mxu0 %v575_v23  ;;  %v321_v32 = vld [vmem:[%s1197_s5 + $0x58] sm:$0xff]  ;;  %v581_v33 = vpack.c.bf16 %v316_v30, %v314_v29  ;;  %v318_v35 = vld [vmem:[%s1197_s5 + $0x40] sm:$0xff]  ;;  %v320_v3 = vld [vmem:[%s1197_s5 + $0x50] sm:$0xff] }
  0x27   :  { %578 = vmatpush1.bf16.msra.mxu0 %v577_v27  ;;  %v585_v38 = vpack.c.bf16 %v320_v3, %v318_v35  ;;  %v328_v47 = vld [vmem:[%s1197_s5 + $0x90] sm:$0xff]  ;;  %v330_v52 = vld [vmem:[%s1197_s5 + $0xa0] sm:$0xff]  ;;  %v357_v22 = vld [vmem:[%s1197_s5 + $0x178] sm:$0xff] }
  0x28   :  { %143 = vmatmul.mubr.f32.gmra.mrb[2].mxu0 %v27_v31  ;;  %542 = vmatpush1.bf16.msra.mxu1 %v541_v36  ;;  %v319_v31 = vld [vmem:[%s1197_s5 + $0x48] sm:$0xff]  ;;  %v593_v50 = vpack.c.bf16 %v328_v47, %v326_v46  ;;  %v332_v53 = vld [vmem:[%s1197_s5 + $0xb0] sm:$0xff]  ;;  %v334_v58 = vld [vmem:[%s1197_s5 + $0xc0] sm:$0xff]  ;;  %v619_v24 = vpack.c.bf16 %v357_v22, %v355_v21 }
  0x29   :  { %544 = vmatprep.subr.bf16.mxu1 %v543_v37  ;;  %580 = vmatprep.subr.bf16.mxu0 %v579_v28  ;;  %v583_v34 = vpack.c.bf16 %v321_v32, %v319_v31  ;;  %v323_v36 = vld [vmem:[%s1197_s5 + $0x68] sm:$0xff]  ;;  %v325_v37 = vld [vmem:[%s1197_s5 + $0x78] sm:$0xff]  ;;  %v597_v56 = vpack.c.bf16 %v332_v53, %v330_v52  ;;  %v336_v59 = vld [vmem:[%s1197_s5 + $0xd0] sm:$0xff] }
  0x2a   :  { %v587_v39 = vpack.c.bf16 %v325_v37, %v323_v36  ;;  %v601_v62 = vpack.c.bf16 %v336_v59, %v334_v58  ;;  %v338_v0 = vld [vmem:[%s1197_s5 + $0xe0] sm:$0xff]  ;;  %v340_v1 = vld [vmem:[%s1197_s5 + $0xf0] sm:$0xff]  ;;  %v359_v27 = vld [vmem:[%s1197_s5 + $0x188] sm:$0xff] }
  0x2b   :  { %582 = vmatpush1.bf16.msra.mxu0 %v581_v33  ;;  %v605_v5 = vpack.c.bf16 %v340_v1, %v338_v0  ;;  %v342_v7 = vld [vmem:[%s1197_s5 + $0x100] sm:$0xff]  ;;  %v344_v8 = vld [vmem:[%s1197_s5 + $0x110] sm:$0xff]  ;;  %v361_v28 = vld [vmem:[%s1197_s5 + $0x198] sm:$0xff] }
  0x2c   :  { %546 = vmatpush1.bf16.msra.mxu1 %v545_v42  ;;  %584 = vmatprep.subr.bf16.mxu0 %v583_v34  ;;  %v327_v42 = vld [vmem:[%s1197_s5 + $0x88] sm:$0xff]  ;;  %v609_v11 = vpack.c.bf16 %v344_v8, %v342_v7  ;;  %v348_v14 = vld [vmem:[%s1197_s5 + $0x130] sm:$0xff]  ;;  %v354_v25 = vld [vmem:[%s1197_s5 + $0x160] sm:$0xff]  ;;  %v623_v30 = vpack.c.bf16 %v361_v28, %v359_v27 }
  0x2d   :  { %548 = vmatprep.subr.bf16.mxu1 %v547_v43  ;;  %v329_v43 = vld [vmem:[%s1197_s5 + $0x98] sm:$0xff]  ;;  %v352_v20 = vld [vmem:[%s1197_s5 + $0x150] sm:$0xff]  ;;  %v358_v31 = vld [vmem:[%s1197_s5 + $0x180] sm:$0xff] }
  0x2e   :  { %v591_v45 = vpack.c.bf16 %v329_v43, %v327_v42  ;;  %v356_v26 = vld [vmem:[%s1197_s5 + $0x170] sm:$0xff]  ;;  %v363_v33 = vld [vmem:[%s1197_s5 + $0x1a8] sm:$0xff]  ;;  %v365_v34 = vld [vmem:[%s1197_s5 + $0x1b8] sm:$0xff]  ;;  %v62_v42 = vlaneseq }
  0x2f   :  { %586 = vmatpush1.bf16.msra.mxu0 %v585_v38  ;;  %v621_v29 = vpack.c.bf16 %v356_v26, %v354_v25  ;;  %v360_v32 = vld [vmem:[%s1197_s5 + $0x190] sm:$0xff]  ;;  %v627_v3 = vpack.c.bf16 %v365_v34, %v363_v33  ;;  %v362_v36 = vld [vmem:[%s1197_s5 + $0x1a0] sm:$0xff]  ;;  %v367_v38 = vld [vmem:[%s1197_s5 + $0x1c8] sm:$0xff] }
  0x30   :  { %550 = vmatpush1.bf16.msra.mxu1 %v549_v48  ;;  %588 = vmatprep.subr.bf16.mxu0 %v587_v39  ;;  %v331_v48 = vld [vmem:[%s1197_s5 + $0xa8] sm:$0xff]  ;;  %v625_v35 = vpack.c.bf16 %v360_v32, %v358_v31  ;;  %v364_v37 = vld [vmem:[%s1197_s5 + $0x1b0] sm:$0xff]  ;;  %v369_v39 = vld [vmem:[%s1197_s5 + $0x1d8] sm:$0xff]  ;;  %v63_v43 = vshrl.u32 %v62_v42, 7 }
  0x31   :  { %552 = vmatprep.subr.bf16.mxu1 %v551_v49  ;;  %v333_v49 = vld [vmem:[%s1197_s5 + $0xb8] sm:$0xff]  ;;  %v629_v40 = vpack.c.bf16 %v364_v37, %v362_v36  ;;  %v631_v41 = vpack.c.bf16 %v369_v39, %v367_v38  ;;  %v371_v0 = vld [vmem:[%s1197_s5 + $0x1e8] sm:$0xff]  ;;  %v217_v7 = vld [vmem:[%s1199_s4] sm:$0x3] }
  0x32   :  { %v595_v51 = vpack.c.bf16 %v333_v49, %v331_v48  ;;  %v68_v46 = vsub.s32 1, %v63_v43  ;;  %v373_v1 = vld [vmem:[%s1197_s5 + $0x1f8] sm:$0xff]  ;;  %v374_v22 = vld [vmem:[%s1200_s6] sm:$0x3] }
  0x33   :  { %590 = vmatpush1.bf16.msra.mxu0 %v589_v44  ;;  %v64_v44 = vsub.s32 0, %v63_v43 }
  0x34   :  { %554 = vmatpush1.bf16.msra.mxu1 %v553_v54  ;;  %592 = vmatprep.subr.bf16.mxu0 %v591_v45  ;;  %v335_v54 = vld [vmem:[%s1197_s5 + $0xc8] sm:$0xff]  ;;  %v60_v45 = vld [vmem:[%s1198_s2] sm:$0x3] }
  0x35   :  { %556 = vmatprep.subr.bf16.mxu1 %v555_v55  ;;  %v337_v55 = vld [vmem:[%s1197_s5 + $0xd8] sm:$0xff]  ;;  %v65_v47 = vrot.slane %v60_v45, %v64_v44  ;;  %v69_v48 = vrot.slane %v60_v45, %v68_v46  ;;  %v222_v8 = vrot.slane %v217_v7, %v64_v44 }
  0x36   :  { %v599_v57 = vpack.c.bf16 %v337_v55, %v335_v54 }
  0x37   :  { %594 = vmatpush1.bf16.msra.mxu0 %v593_v50 }
  0x38   :  { %558 = vmatpush1.bf16.msra.mxu1 %v557_v60  ;;  %596 = vmatprep.subr.bf16.mxu0 %v595_v51  ;;  %v339_v60 = vld [vmem:[%s1197_s5 + $0xe8] sm:$0xff] }
  0x39   :  { %560 = vmatprep.subr.bf16.mxu1 %v559_v61  ;;  %v341_v61 = vld [vmem:[%s1197_s5 + $0xf8] sm:$0xff] }
  0x3a   :  { %v603_v63 = vpack.c.bf16 %v341_v61, %v339_v60  ;;  %v366_v61 = vld [vmem:[%s1197_s5 + $0x1c0] sm:$0xff] }
  0x3b   :  { %598 = vmatpush1.bf16.msra.mxu0 %v597_v56 }
  0x3c   :  { %562 = vmatpush1.bf16.msra.mxu1 %v561_v2  ;;  %600 = vmatprep.subr.bf16.mxu0 %v599_v57  ;;  %v343_v2 = vld [vmem:[%s1197_s5 + $0x108] sm:$0xff] }
  0x3d   :  { %564 = vmatprep.subr.bf16.mxu1 %v563_v4  ;;  %v345_v4 = vld [vmem:[%s1197_s5 + $0x118] sm:$0xff] }
  0x3e   :  { %v607_v6 = vpack.c.bf16 %v345_v4, %v343_v2  ;;  %v635_v2 = vpack.c.bf16 %v373_v1, %v371_v0  ;;  %v370_v4 = vld [vmem:[%s1197_s5 + $0x1e0] sm:$0xff] }
  0x3f   :  { %602 = vmatpush1.bf16.msra.mxu0 %v601_v62  ;;  %v368_v62 = vld [vmem:[%s1197_s5 + $0x1d0] sm:$0xff] }
  0x40   :  { %566 = vmatpush1.bf16.msra.mxu1 %v565_v9  ;;  %604 = vmatprep.subr.bf16.mxu0 %v603_v63  ;;  %v347_v9 = vld [vmem:[%s1197_s5 + $0x128] sm:$0xff]  ;;  %v633_v63 = vpack.c.bf16 %v368_v62, %v366_v61 }
  0x41   :  { %568 = vmatprep.subr.bf16.mxu1 %v567_v10  ;;  %v349_v10 = vld [vmem:[%s1197_s5 + $0x138] sm:$0xff] }
  0x42   :  { %v611_v12 = vpack.c.bf16 %v349_v10, %v347_v9  ;;  %v226_v9 = vrot.slane %v217_v7, %v68_v46 }
  0x43   :  { %606 = vmatpush1.bf16.msra.mxu0 %v605_v5  ;;  %v372_v5 = vld [vmem:[%s1197_s5 + $0x1f0] sm:$0xff] }
  0x44   :  { %570 = vmatpush1.bf16.msra.mxu1 %v569_v13  ;;  %608 = vmatprep.subr.bf16.mxu0 %v607_v6  ;;  %v346_v13 = vld [vmem:[%s1197_s5 + $0x120] sm:$0xff]  ;;  %v637_v6 = vpack.c.bf16 %v372_v5, %v370_v4 }
  0x45   :  { %572 = vmatprep.subr.bf16.mxu1 %v571_v16  ;;  %v353_v16 = vld [vmem:[%s1197_s5 + $0x158] sm:$0xff]  ;;  %v613_v17 = vpack.c.bf16 %v348_v14, %v346_v13 }
  0x46   :  { %v615_v18 = vpack.c.bf16 %v353_v16, %v351_v15 }
  0x47   :  { %610 = vmatpush1.bf16.msra.mxu0 %v609_v11 }
  0x48   :  { %574 = vmatpush1.bf16.msra.mxu1 %v573_v19  ;;  %612 = vmatprep.subr.bf16.mxu0 %v611_v12  ;;  %v350_v19 = vld [vmem:[%s1197_s5 + $0x140] sm:$0xff] }
  0x49   :  { %v617_v23 = vpack.c.bf16 %v352_v20, %v350_v19 }
  0x4b   :  { %614 = vmatpush1.bf16.msra.mxu0 %v613_v17 }
  0x4c   :  { %616 = vmatprep.subr.bf16.mxu0 %v615_v18 }
  0x4f   :  { %618 = vmatpush1.bf16.msra.mxu0 %v617_v23  ;;  %v379_v23 = vrot.slane %v374_v22, %v64_v44 }
  0x50   :  { %620 = vmatprep.subr.bf16.mxu0 %v619_v24  ;;  %v383_v24 = vrot.slane %v374_v22, %v68_v46 }
  0x53   :  { %622 = vmatpush1.bf16.msra.mxu0 %v621_v29 }
  0x54   :  { %624 = vmatprep.subr.bf16.mxu0 %v623_v30 }
  0x57   :  { %626 = vmatpush1.bf16.msra.mxu0 %v625_v35 }
  0x58   :  { %628 = vmatprep.subr.bf16.mxu0 %v627_v3 }
  0x5b   :  { %630 = vmatpush1.bf16.msra.mxu0 %v629_v40 }
  0x5c   :  { %632 = vmatprep.subr.bf16.mxu0 %v631_v41 }
  0x5f   :  { %634 = vmatpush1.bf16.msra.mxu0 %v633_v63 }
  0x60   :  { %636 = vmatprep.subr.bf16.mxu0 %v635_v2 }
  0x63   :  { %638 = vmatpush1.bf16.msra.mxu0 %v637_v6 }
  0xf7   :  { %v138_v49 = vpop.f32.mrb[0].mxu0 }
  0xf8   :  { %v139_v50 = vadd.f32 %v138_v49, %v65_v47  ;;  %v140_v51 = vpop.f32.mrb[1].mxu0 }
  0xf9   :  { %v141_v52 = vadd.f32 %v140_v51, %v69_v48 }
  0xfa   :  { %v149_v55 = vmax.f32 %v139_v50, 0.0 }
  0xfb   :  { %v144_v53 = vpop.f32.mrb[2].mxu0  ;;  %v150_v54 = vmax.f32 %v141_v52, 0.0 }
  0xfc   :  { %v145_v56 = vadd.f32 %v144_v53, %v65_v47  ;;  %v146_v57 = vpop.f32.mrb[3].mxu0 }
  0xfd   :  { %v147_v58 = vadd.f32 %v146_v57, %v69_v48  ;;  %293 = vmatprep.mubr.f32.mxu1 %v150_v54 }
  0xfe   :  { %294 = vmatmul.mubr.f32.vlgmr.msra.gmra.mrb[0].mxu1 %v149_v55  ;;  %v151_v60 = vmax.f32 %v145_v56, 0.0 }
  0xff   :  { %v152_v59 = vmax.f32 %v147_v58, 0.0 }
 0x101   :  { %299 = vmatprep.mubr.f32.mxu1 %v152_v59 }
 0x102   :  { %300 = vmatmul.mubr.f32.gmra.mrb[2].mxu1 %v151_v60 }
 0x1d1   :  { %v295_v10 = vpop.f32.mrb[0].mxu1 }
 0x1d2   :  { %v296_v11 = vadd.f32 %v295_v10, %v222_v8  ;;  %v297_v12 = vpop.f32.mrb[1].mxu1 }
 0x1d3   :  { %v298_v13 = vadd.f32 %v297_v12, %v226_v9 }
 0x1d4   :  { %v306_v16 = vmax.f32 %v296_v11, 0.0 }
 0x1d5   :  { %v307_v14 = vmax.f32 %v298_v13, 0.0  ;;  %v301_v15 = vpop.f32.mrb[2].mxu1 }
 0x1d6   :  { %v302_v17 = vadd.f32 %v301_v15, %v222_v8  ;;  %v303_v18 = vpop.f32.mrb[3].mxu1 }
 0x1d7   :  { %v304_v19 = vadd.f32 %v303_v18, %v226_v9  ;;  %450 = vmatprep.mubr.f32.mxu0 %v307_v14 }
 0x1d8   :  { %451 = vmatmul.mubr.f32.vlgmr.msra.gmra.mrb[4].mxu0 %v306_v16  ;;  %v308_v21 = vmax.f32 %v302_v17, 0.0 }
 0x1d9   :  { %v309_v20 = vmax.f32 %v304_v19, 0.0 }
 0x1db   :  { %456 = vmatprep.mubr.f32.mxu0 %v309_v20 }
 0x1dc   :  { %457 = vmatmul.mubr.f32.gmra.mrb[6].mxu0 %v308_v21 }
 0x2ab   :  { %v452_v25 = vpop.f32.mrb[4].mxu0 }
 0x2ac   :  { %v453_v26 = vadd.f32 %v452_v25, %v379_v23  ;;  %v454_v27 = vpop.f32.mrb[5].mxu0 }
 0x2ad   :  { %v455_v28 = vadd.f32 %v454_v27, %v383_v24 }
 0x2ae   :  { %463 = vst [vmem:[%s1201_s7] sm:$0xff] %v453_v26 }
 0x2af   :  { %v465_v29 = vmax.f32 %v455_v28, -20.0  ;;  %v458_v30 = vpop.f32.mrb[6].mxu0 }
 0x2b0   :  { %v459_v31 = vadd.f32 %v458_v30, %v379_v23  ;;  %v460_v32 = vpop.f32.mrb[7].mxu0 }
 0x2b1   :  { %v467_v33 = vmin.f32 %v465_v29, 2.0  ;;  %v461_v34 = vadd.f32 %v460_v32, %v383_v24 }
 0x2b2   :  { %464 = vst [vmem:[%s1201_s7 + $0x10] sm:$0xff] %v459_v31 }
 0x2b3   :  { %v469_v35 = vmul.f32 1.442695, %v467_v33  ;;  %v466_v3 = vmax.f32 %v461_v34, -20.0 }
 0x2b5   :  { %640 = vpow2.f32 %v469_v35  ;;  %v468_v36 = vmin.f32 %v466_v3, 2.0 }
 0x2b7   :  { %v471_v37 = vmul.f32 1.442695, %v468_v36 }
 0x2b9   :  { %642 = vpow2.f32 %v471_v37 }
 0x2bf   :  { %v641_v38 = vpop.eup %640 }
 0x2c0   :  { %473 = vst [vmem:[%s1201_s7 + $0x8] sm:$0xff] %v641_v38 }
 0x2c3   :  { %v643_v39 = vpop.eup %642 }
 0x2c4   :  { %474 = vst [vmem:[%s1201_s7 + $0x18] sm:$0xff] %v643_v39 }

</bundles_post_ra>
